<compile_context>
chip_gen: v5e
topology: v5e:2x2
jax: 0.10.0
libtpu: 0.0.40
codegen_flags: <defaults>
</compile_context>

<pallas_src>
import jax
import jax.numpy as jnp
from jax import lax
from jax.experimental import pallas as pl
from jax.experimental.pallas import tpu as pltpu

EPS = 1e-5

# Per-buffer VMEM target (bytes). 6 MiB -> ~24 MiB of double-buffered in+out
# pipeline buffers, inside the explicit 48 MiB scoped-VMEM limit on all chips
# (v7x physical VMEM is 64 MiB; v5e/v6e have 128 MiB).
_TARGET_BLOCK_BYTES = 6 << 20
_VMEM_LIMIT_BYTES = 48 << 20
# Arrays larger than this must produce a grid with >= 2 blocks so v7x's two
# TensorCores both get work via the "parallel" dimension_semantics.
_MIN_PARALLEL_BYTES = 2 << 20


def _round_up(x, m):
    return ((x + m - 1) // m) * m


def _sublane_multiple(dtype):
    """Rows per packed vreg sublane group: 8 for 32-bit, 16 for 16-bit, 32 for 8-bit."""
    itemsize = jnp.dtype(dtype).itemsize
    return max(8, 32 // max(1, itemsize))


def _choose_blocks(R, L, dtype,
                   target_bytes=_TARGET_BLOCK_BYTES,
                   min_parallel_bytes=_MIN_PARALLEL_BYTES):
    """Pick (row_block, lane_block) for the flattened (R, L) view.

    Row block is a multiple of the dtype's sublane packing (or the full extent
    R); lane block is the full extent L, or a multiple of 128 capped so one
    block stays within the per-buffer byte target (Pallas masks the partial
    edge block). Guarantees >= 2 grid blocks for non-trivial arrays so v7x can
    shard across both TensorCores.
    """
    itemsize = jnp.dtype(dtype).itemsize
    sub = _sublane_multiple(dtype)
    total_bytes = R * L * itemsize

    # ---- lane block: full L when a sub-row slab fits the target, else a ----
    # ---- multiple of 128 (partial edge block is masked automatically).  ----
    if L <= 128 or sub * L * itemsize <= target_bytes:
        lb = L
    else:
        lb = (target_bytes // (sub * itemsize)) // 128 * 128
        lb = max(128, min(lb, (L // 128) * 128))

    # ---- row block: fill the per-buffer byte target ----
    rows_target = max(1, target_bytes // max(1, lb * itemsize))
    if rows_target >= R:
        rb = R  # full extent: always layout-legal
    else:
        rb = max(sub, (rows_target // sub) * sub)
        rb = min(rb, R)

    # ---- guarantee >= 2 grid blocks for dual-TC (v7x) on non-trivial arrays ----
    if (total_bytes > min_parallel_bytes
            and pl.cdiv(R, rb) * pl.cdiv(L, lb) < 2):
        if R > sub:
            rb = min(rb, _round_up(-(-R // 2), sub))       # split rows ~in half
        elif L > 256:
            lb = min(lb, _round_up(-(-L // 2), 128))       # split lanes ~in half
        # else: array is tiny along both axes; a single block is fine.

    return rb, lb


def _frozen_bn_kernel(scale_ref, shift_ref, x_ref, o_ref):
    # scale_ref / shift_ref: (Rb, 1) f32 tiles -> broadcast along the lane axis.
    # x_ref / o_ref: (Rb, Lb) tiles. Single fused multiply-add, single store.
    o_ref[...] = (x_ref[...] * scale_ref[...] + shift_ref[...]).astype(o_ref.dtype)


def frozen_batchnorm2d(x, weight, bias, running_mean, running_var):
    """x: (N, C, H, W). Params: (C,) each. Matches FrozenBatchNorm2d.forward."""
    N, C, H, W = x.shape

    # Precompute the frozen affine once (O(C), fused by XLA) in f32.
    scale = weight.astype(jnp.float32) * lax.rsqrt(
        running_var.astype(jnp.float32) + EPS)
    shift = bias.astype(jnp.float32) - running_mean.astype(jnp.float32) * scale

    # Flatten to a lane-dense 2D slab: rows = (n, c) pairs, lanes = spatial.
    R, L = N * C, H * W
    x2 = x.reshape(R, L)
    scale2 = jnp.tile(scale, N).reshape(R, 1)   # row r = n*C + c -> scale[c]
    shift2 = jnp.tile(shift, N).reshape(R, 1)

    rb, lb = _choose_blocks(R, L, x.dtype)
    grid = (pl.cdiv(R, rb), pl.cdiv(L, lb))

    itemsize = jnp.dtype(x.dtype).itemsize
    cost = pl.CostEstimate(
        flops=2 * R * L,
        bytes_accessed=2 * R * L * itemsize + 8 * R,
        transcendentals=0,
    )

    out2 = pl.pallas_call(
        _frozen_bn_kernel,
        out_shape=jax.ShapeDtypeStruct((R, L), x.dtype),
        grid=grid,
        in_specs=[
            pl.BlockSpec((rb, 1), lambda i, j: (i, 0)),    # scale (lane broadcast)
            pl.BlockSpec((rb, 1), lambda i, j: (i, 0)),    # shift
            pl.BlockSpec((rb, lb), lambda i, j: (i, j)),   # x
        ],
        out_specs=pl.BlockSpec((rb, lb), lambda i, j: (i, j)),
        compiler_params=pltpu.CompilerParams(
            dimension_semantics=("parallel", "parallel"),
            vmem_limit_bytes=_VMEM_LIMIT_BYTES,
        ),
        cost_estimate=cost,
    )(scale2, shift2, x2)

    return out2.reshape(N, C, H, W)


def frozen_batchnorm2d_ref(x, weight, bias, running_mean, running_var):
    w = weight.reshape(1, -1, 1, 1)
    b = bias.reshape(1, -1, 1, 1)
    rv = running_var.reshape(1, -1, 1, 1)
    rm = running_mean.reshape(1, -1, 1, 1)
    scale = w * lax.rsqrt(rv + EPS)
    bias_ = b - rm * scale
    return x * scale + bias_


if __name__ == "__main__":
    key = jax.random.PRNGKey(0)
    kx, kw, kb, km, kv = jax.random.split(key, 5)

    N, C, H, W = 2, 4, 16, 16
    x = jax.random.normal(kx, (N, C, H, W), dtype=jnp.float32)

    # Deterministic "frozen" parameters (module buffers have shape (C,)).
    weight = jnp.ones((C,), jnp.float32) + 0.1 * jax.random.normal(kw, (C,))
    bias = jnp.zeros((C,), jnp.float32) + 0.1 * jax.random.normal(kb, (C,))
    running_mean = 0.5 * jax.random.normal(km, (C,), dtype=jnp.float32)
    running_var = jnp.abs(jax.random.normal(kv, (C,), dtype=jnp.float32)) + 0.5

    # f32 check.
    out = frozen_batchnorm2d(x, weight, bias, running_mean, running_var)
    out = jax.block_until_ready(out)
    ref = frozen_batchnorm2d_ref(x, weight, bias, running_mean, running_var)
    assert out.shape == (N, C, H, W)
    assert jnp.allclose(out, ref, atol=1e-5, rtol=1e-5)

    # bf16 check (kernel returns x.dtype; loose tolerance vs f32 reference).
    x_bf16 = x.astype(jnp.bfloat16)
    out_bf16 = frozen_batchnorm2d(x_bf16, weight, bias, running_mean, running_var)
    out_bf16 = jax.block_until_ready(out_bf16)
    assert out_bf16.dtype == jnp.bfloat16
    assert jnp.allclose(out_bf16.astype(jnp.float32), ref, atol=3e-2, rtol=3e-2)

    print("KERNEL_OK")
</pallas_src>

<mosaic_0001>
module attributes {stable_mosaic.version = 11 : i64} {
  func.func @_frozen_bn_kernel(%arg0: i32, %arg1: i32, %arg2: memref<8x1xf32, #tpu.memory_space<vmem>>, %arg3: memref<8x1xf32, #tpu.memory_space<vmem>>, %arg4: memref<8x256xf32, #tpu.memory_space<vmem>>, %arg5: memref<8x256xf32, #tpu.memory_space<vmem>>) attributes {dimension_semantics = [#tpu.dimension_semantics<parallel>, #tpu.dimension_semantics<parallel>], iteration_bounds = array<i64: 1, 1>, scalar_prefetch = 0 : i64, scratch_operands = 0 : i64, tpu.core_type = #tpu.core_type<tc>, window_params = [{transform_indices = @transform_0, window_bounds = array<i64: 8, 1>}, {transform_indices = @transform_1, window_bounds = array<i64: 8, 1>}, {transform_indices = @transform_2, window_bounds = array<i64: 8, 256>}, {transform_indices = @transform_3, window_bounds = array<i64: 8, 256>}]} {
    %c0 = arith.constant 0 : index
    %c0_0 = arith.constant 0 : index
    %0 = vector.load %arg4[%c0, %c0_0] : memref<8x256xf32, #tpu.memory_space<vmem>>, vector<8x256xf32>
    %c0_1 = arith.constant 0 : index
    %c0_2 = arith.constant 0 : index
    %1 = vector.load %arg2[%c0_1, %c0_2] : memref<8x1xf32, #tpu.memory_space<vmem>>, vector<8x1xf32>
    %2 = vector.broadcast %1 : vector<8x1xf32> to vector<8x256xf32>
    %3 = arith.mulf %0, %2 : vector<8x256xf32>
    %c0_3 = arith.constant 0 : index
    %c0_4 = arith.constant 0 : index
    %4 = vector.load %arg3[%c0_3, %c0_4] : memref<8x1xf32, #tpu.memory_space<vmem>>, vector<8x1xf32>
    %5 = vector.broadcast %4 : vector<8x1xf32> to vector<8x256xf32>
    %6 = arith.addf %3, %5 : vector<8x256xf32>
    %c0_5 = arith.constant 0 : index
    %c0_6 = arith.constant 0 : index
    %7 = vector.load %arg5[%c0_5, %c0_6] : memref<8x256xf32, #tpu.memory_space<vmem>>, vector<8x256xf32>
    tpu.vector_store %arg5[%c0_5, %c0_6], %6 {strides = array<i32>} : memref<8x256xf32, #tpu.memory_space<vmem>>, vector<8x256xf32>,
    return
  }
  func.func @transform_0(%arg0: i32, %arg1: i32) -> (i32, i32) {
    %c0_i32 = arith.constant 0 : i32
    %c0_i32_0 = arith.constant 0 : i32
    return %arg0, %c0_i32 : i32, i32
  }
  func.func @transform_1(%arg0: i32, %arg1: i32) -> (i32, i32) {
    %c0_i32 = arith.constant 0 : i32
    %c0_i32_0 = arith.constant 0 : i32
    return %arg0, %c0_i32 : i32, i32
  }
  func.func @transform_2(%arg0: i32, %arg1: i32) -> (i32, i32) {
    %c0_i32 = arith.constant 0 : i32
    return %arg0, %arg1 : i32, i32
  }
  func.func @transform_3(%arg0: i32, %arg1: i32) -> (i32, i32) {
    %c0_i32 = arith.constant 0 : i32
    return %arg0, %arg1 : i32, i32
  }
}

</mosaic_0001>

<bundles_post_ra>
// kernel: tpu_custom_call.1
= control target key start
LH: loop header
LB: loop body
LE: loop exit
PB: predicated region body
PF: predicated region fallthrough
CT: control target
= control target key end

     0   :  { %s117_s0 = inlined_call_operand.vmem [shape: f32[8,1], index: 0, kind: input, shape index: {}]   ;;  %s118_s1 = inlined_call_operand.vmem [shape: f32[8,1], index: 1, kind: input, shape index: {}]   ;;  %s119_s2 = inlined_call_operand.vmem [shape: f32[8,256], index: 2, kind: input, shape index: {}]   ;;  %s120_s3 = inlined_call_operand.hbm [shape: f32[8,256], index: 3, kind: output, shape index: {}]  }
   0x1   :  { %v17_v0 = vld [vmem:[%s117_s0] sm:$0xff] }
   0x2   :  { %8 = vsyncpa [#allocation3], 0  ;;  %v80_v1 = vmov 0   ;;  %v25_v2 = vld [vmem:[%s118_s1] sm:$0xff]  ;;  %v16_v5 = vld [vmem:[%s119_s2 + $0x8] sm:$0xff]  ;;  %s81_s0 = smov [#allocation2]  }
   0x3   :  { %53 = vset.pattern.permute.xlu0 %v80_v1  ;;  %v15_v4 = vld [vmem:[%s119_s2] sm:$0xff]  ;;  %s40_s20 = sshll.u32 %s81_s0, 4  ;;  %s42_s23 = sshll.u32 %s120_s3, 4  ;;  %s41_s20 = int_to_ptr.vmem [resolvable:$true] %s40_s20  ;;  %s43_s23 = int_to_ptr.hbm [resolvable:$true] %s42_s23 }
   0x4   :  { %20 = vperm.xlu0 %53, %v17_v0  }
   0xc   :  { %28 = vperm.xlu0 %53, %v25_v2  }
  0x76   :  { %v21_v3 = vpop.permute.xlu0 %20 }
  0x77   :  { %v23_v6 = vmul.f32 %v21_v3, %v15_v4  ;;  %v24_v7 = vmul.f32 %v21_v3, %v16_v5 }
  0x7e   :  { %v29_v8 = vpop.permute.xlu0 %28 }
  0x7f   :  { %v31_v9 = vadd.f32 %v29_v8, %v23_v6  ;;  %v32_v10 = vadd.f32 %v29_v8, %v24_v7 }
  0x81   :  { %33 = vst [vmem:[#allocation2] sm:$0xff] %v31_v9 }
  0x82   :  { %34 = vst [vmem:[#allocation2 + $0x8] sm:$0xff] %v32_v10 }
  0x83   :  { %45 = dma.vmem_to_hbm [thread:$0]  %s41_s20, 256, %s43_s23, [#allocation3]  }
  0x84   :  { %78 = dma.done.wait [#allocation3], 256  }
  0x85   :  { %79 = vsyncadd [#allocation3], 4294967040 }
  0x86   :  { %50 = vsyncpa [#allocation3], 1 }

</bundles_post_ra>
